<compile_context>
chip_gen: v7x
topology: tpu7x:2x2x1
jax: 0.10.0
libtpu: 0.0.40
codegen_flags: <defaults>
</compile_context>

<pallas_src>
import functools
import math

import jax
import jax.numpy as jnp
from jax import lax
from jax.experimental import pallas as pl
from jax.experimental.pallas import tpu as pltpu


def _up_fused_kernel(x_ref, w1_ref, b1_ref, w2_ref, b2_ref, w3_ref, b3_ref,
                     g_ref, bb_ref, oe_ref, oo_ref, *, t_real, inv_c, ln_eps):
    """One batch element of Up.forward, fully fused.

    x_ref : (C_in_p, T_p + 2)   causal-padded (2 left zeros) + lane-padded input
    w*_ref: (C_p, 3*C_*)        im2col-flattened conv weights (tap-major blocks)
    b*_ref: (C_p, 1)            conv biases;  g/bb: LayerNorm gamma/beta
    oe/oo : (C_p, T_p)          even / odd output time phases (out[2j] / out[2j+1])
    """
    t_p = oe_ref.shape[-1]

    # ---- conv1 (causal k=3): y[j] = sum_k w1_k . x[j-2+k] ------------------
    slab1 = jnp.concatenate([x_ref[:, pl.ds(k, t_p)] for k in range(3)], axis=0)
    y = jnp.dot(w1_ref[...], slab1, preferred_element_type=jnp.float32)
    y = y + b1_ref[...]

    # ---- linear x2 upsample (align_corners=False), even/odd phase form -----
    # y_up[2j]   = 0.75*y[j] + 0.25*y[j-1]   (left edge clamped)
    # y_up[2j+1] = 0.75*y[j] + 0.25*y[j+1]   (right edge clamped at j = T-1)
    lane = lax.broadcasted_iota(jnp.int32, y.shape, 1)
    y_left = jnp.concatenate([y[:, :1], y[:, :-1]], axis=-1)        # clamp left
    y_right = jnp.concatenate([y[:, 1:], y[:, -1:]], axis=-1)
    y_right = jnp.where(lane == t_real - 1, y, y_right)             # clamp right
    even = 0.75 * y + 0.25 * y_left                                 # y_up[2j]
    odd = 0.75 * y + 0.25 * y_right                                 # y_up[2j+1]

    zero_col = jnp.zeros_like(even[:, :1])
    even_m1 = jnp.concatenate([zero_col, even[:, :-1]], axis=-1)    # y_up[2j-2]
    odd_m1 = jnp.concatenate([zero_col, odd[:, :-1]], axis=-1)      # y_up[2j-1]

    def conv_phase(w_ref, b_ref, a, b, c):
        # causal k=3 conv evaluated on one output phase (polyphase decomposition)
        slab = jnp.concatenate([a, b, c], axis=0)
        return jnp.dot(w_ref[...], slab,
                       preferred_element_type=jnp.float32) + b_ref[...]

    def silu_ln(pre):
        a = pre * (1.0 / (1.0 + jnp.exp(-pre)))                     # SiLU
        # LayerNorm over (real) channels; padded channels contribute exact 0.
        mu = jnp.sum(a, axis=0, keepdims=True) * inv_c
        ex2 = jnp.sum(a * a, axis=0, keepdims=True) * inv_c
        var = ex2 - mu * mu
        return (a - mu) * lax.rsqrt(var + ln_eps) * g_ref[...] + bb_ref[...]

    # ---- conv2 + SiLU + LayerNorm(C), per phase -----------------------------
    h_even = silu_ln(conv_phase(w2_ref, b2_ref, even_m1, odd_m1, even))
    h_odd = silu_ln(conv_phase(w2_ref, b2_ref, odd_m1, even, odd))

    # ---- conv3 + residual skip (block1 proj = Identity) ---------------------
    he_m1 = jnp.concatenate([zero_col, h_even[:, :-1]], axis=-1)
    ho_m1 = jnp.concatenate([zero_col, h_odd[:, :-1]], axis=-1)
    out_even = conv_phase(w3_ref, b3_ref, he_m1, ho_m1, h_even) + even
    out_odd = conv_phase(w3_ref, b3_ref, ho_m1, h_even, h_odd) + odd

    oe_ref[...] = out_even.astype(oe_ref.dtype)
    oo_ref[...] = out_odd.astype(oo_ref.dtype)


def up_forward(x, p, *, ln_eps=1e-5):
    """Pallas forward of Up(dim_in, dim_out, time_dim=-1).

    x : (N, dim_in, T) float32 -> (N, dim_out, 2*T) float32
    """
    n, c_in, t = x.shape
    c_out, c_in_w, k = p["w_up"].shape
    assert c_in_w == c_in and k == 3

    c_in_p = 8 * pl.cdiv(c_in, 8)          # sublane-pad input channels
    c_p = 8 * pl.cdiv(c_out, 8)            # sublane-pad output channels
    t_p = 128 * pl.cdiv(t, 128)            # lane-pad time (per upsample phase)

    # Causal (left) halo of K-1 zeros + right zeros up to the lane multiple.
    x_slab = jnp.pad(x.astype(jnp.float32),
                     ((0, 0), (0, c_in_p - c_in), (k - 1, t_p - t)))

    def flat_w(w, ci_p):
        # im2col flatten: w_flat[:, kk*ci_p + c] == w[:, c, kk]
        c_o, c_i, kk = w.shape
        w_pad = jnp.pad(w.astype(jnp.float32),
                        ((0, c_p - c_o), (0, ci_p - c_i), (0, 0)))
        return jnp.transpose(w_pad, (0, 2, 1)).reshape(c_p, kk * ci_p)

    def col(v):
        return jnp.pad(v.astype(jnp.float32), (0, c_p - v.shape[0])).reshape(c_p, 1)

    w1 = flat_w(p["w_up"], c_in_p); b1 = col(p["b_up"])
    w2 = flat_w(p["w_n1"], c_p);    b2 = col(p["b_n1"])
    w3 = flat_w(p["w_n2"], c_p);    b3 = col(p["b_n2"])
    g = col(p["ln_g"]);             bb = col(p["ln_b"])

    kernel = functools.partial(_up_fused_kernel, t_real=t,
                               inv_c=1.0 / float(c_out), ln_eps=ln_eps)

    const2 = lambda i: (0, 0)
    o_even, o_odd = pl.pallas_call(
        kernel,
        out_shape=(jax.ShapeDtypeStruct((n, c_p, t_p), jnp.float32),
                   jax.ShapeDtypeStruct((n, c_p, t_p), jnp.float32)),
        grid=(n,),
        in_specs=[
            # Full padded time slab per batch element (resident for the step).
            pl.BlockSpec((None, c_in_p, t_p + k - 1), lambda i: (i, 0, 0)),
            # Weights / bias / LN params: constant index_map -> VMEM resident.
            pl.BlockSpec((c_p, k * c_in_p), const2),
            pl.BlockSpec((c_p, 1), const2),
            pl.BlockSpec((c_p, k * c_p), const2),
            pl.BlockSpec((c_p, 1), const2),
            pl.BlockSpec((c_p, k * c_p), const2),
            pl.BlockSpec((c_p, 1), const2),
            pl.BlockSpec((c_p, 1), const2),
            pl.BlockSpec((c_p, 1), const2),
        ],
        out_specs=(pl.BlockSpec((None, c_p, t_p), lambda i: (i, 0, 0)),
                   pl.BlockSpec((None, c_p, t_p), lambda i: (i, 0, 0))),
        compiler_params=pltpu.CompilerParams(
            dimension_semantics=("parallel",),
            vmem_limit_bytes=32 * 1024 * 1024),
    )(x_slab, w1, b1, w2, b2, w3, b3, g, bb)

    even = o_even[:, :c_out, :t]
    odd = o_odd[:, :c_out, :t]
    # Interleave the two time phases: out[..., 2j] = even[j], out[..., 2j+1] = odd[j].
    return jnp.stack([even, odd], axis=-1).reshape(n, c_out, 2 * t)


# ----------------------------- pure-JAX reference ---------------------------

def upsample_linear_x2(y):
    """nn.Upsample(scale_factor=2, mode='linear', align_corners=False)."""
    n, c, t = y.shape
    left = jnp.concatenate([y[:, :, :1], y[:, :, :-1]], axis=-1)
    right = jnp.concatenate([y[:, :, 1:], y[:, :, -1:]], axis=-1)
    even = 0.75 * y + 0.25 * left
    odd = 0.75 * y + 0.25 * right
    return jnp.stack([even, odd], axis=-1).reshape(n, c, 2 * t)


def _conv_ref(x, w, b):
    k = w.shape[-1]
    y = lax.conv_general_dilated(
        x, w, window_strides=(1,), padding=[(k - 1, k - 1)],
        dimension_numbers=("NCH", "OIH", "NCH"),
        precision=lax.Precision.HIGHEST)
    y = y + b[None, :, None]
    return y[:, :, : x.shape[2]]            # chomp = k - stride = k - 1


def up_forward_ref(x, p):
    y = _conv_ref(x, p["w_up"], p["b_up"])
    y = upsample_linear_x2(y)
    h = _conv_ref(y, p["w_n1"], p["b_n1"])
    h = h * (1.0 / (1.0 + jnp.exp(-h)))                      # SiLU
    mu = jnp.mean(h, axis=1, keepdims=True)                  # LayerNorm over C
    var = jnp.mean(jnp.square(h - mu), axis=1, keepdims=True)
    h = (h - mu) * lax.rsqrt(var + 1e-5)
    h = h * p["ln_g"][None, :, None] + p["ln_b"][None, :, None]
    h = _conv_ref(h, p["w_n2"], p["b_n2"])
    return h + y


if __name__ == "__main__":
    N, DIM_IN, DIM_OUT, T = 2, 4, 8, 16
    K = 3

    key = jax.random.PRNGKey(0)
    keys = jax.random.split(key, 9)
    x = jax.random.normal(keys[0], (N, DIM_IN, T), dtype=jnp.float32)

    def conv_init(kw, kb, c_out, c_in, ksz):
        bound = 1.0 / math.sqrt(c_in * ksz)
        w = jax.random.uniform(kw, (c_out, c_in, ksz), minval=-bound,
                               maxval=bound, dtype=jnp.float32)
        b = jax.random.uniform(kb, (c_out,), minval=-bound, maxval=bound,
                               dtype=jnp.float32)
        return w, b

    w_up, b_up = conv_init(keys[1], keys[2], DIM_OUT, DIM_IN, K)
    w_n1, b_n1 = conv_init(keys[3], keys[4], DIM_OUT, DIM_OUT, K)
    w_n2, b_n2 = conv_init(keys[5], keys[6], DIM_OUT, DIM_OUT, K)
    ln_g = 1.0 + 0.1 * jax.random.normal(keys[7], (DIM_OUT,), dtype=jnp.float32)
    ln_b = 0.1 * jax.random.normal(keys[8], (DIM_OUT,), dtype=jnp.float32)

    params = dict(w_up=w_up, b_up=b_up, w_n1=w_n1, b_n1=b_n1,
                  w_n2=w_n2, b_n2=b_n2, ln_g=ln_g, ln_b=ln_b)

    out = jax.block_until_ready(jax.jit(up_forward)(x, params))
    ref = up_forward_ref(x, params)

    assert out.shape == (N, DIM_OUT, 2 * T), (out.shape, ref.shape)
    max_err = float(jnp.max(jnp.abs(out - ref)))
    assert jnp.allclose(out, ref, atol=1e-4, rtol=1e-4), max_err

    print("KERNEL_OK")
</pallas_src>

<mosaic_0001>
module attributes {stable_mosaic.version = 11 : i64} {
  func.func @_up_fused_kernel(%arg0: i32, %arg1: memref<1x8x130xf32, #tpu.memory_space<vmem>>, %arg2: memref<8x24xf32, #tpu.memory_space<vmem>>, %arg3: memref<8x1xf32, #tpu.memory_space<vmem>>, %arg4: memref<8x24xf32, #tpu.memory_space<vmem>>, %arg5: memref<8x1xf32, #tpu.memory_space<vmem>>, %arg6: memref<8x24xf32, #tpu.memory_space<vmem>>, %arg7: memref<8x1xf32, #tpu.memory_space<vmem>>, %arg8: memref<8x1xf32, #tpu.memory_space<vmem>>, %arg9: memref<8x1xf32, #tpu.memory_space<vmem>>, %arg10: memref<1x8x128xf32, #tpu.memory_space<vmem>>, %arg11: memref<1x8x128xf32, #tpu.memory_space<vmem>>) attributes {dimension_semantics = [#tpu.dimension_semantics<parallel>], iteration_bounds = array<i64: 2>, scalar_prefetch = 0 : i64, scratch_operands = 0 : i64, tpu.core_type = #tpu.core_type<tc>, window_params = [{transform_indices = @transform_0, window_bounds = array<i64: 1, 8, 130>}, {pipeline_mode = #tpu.pipeline_mode<synchronous>, transform_indices = @transform_1, window_bounds = array<i64: 8, 24>}, {pipeline_mode = #tpu.pipeline_mode<synchronous>, transform_indices = @transform_2, window_bounds = array<i64: 8, 1>}, {pipeline_mode = #tpu.pipeline_mode<synchronous>, transform_indices = @transform_3, window_bounds = array<i64: 8, 24>}, {pipeline_mode = #tpu.pipeline_mode<synchronous>, transform_indices = @transform_4, window_bounds = array<i64: 8, 1>}, {pipeline_mode = #tpu.pipeline_mode<synchronous>, transform_indices = @transform_5, window_bounds = array<i64: 8, 24>}, {pipeline_mode = #tpu.pipeline_mode<synchronous>, transform_indices = @transform_6, window_bounds = array<i64: 8, 1>}, {pipeline_mode = #tpu.pipeline_mode<synchronous>, transform_indices = @transform_7, window_bounds = array<i64: 8, 1>}, {pipeline_mode = #tpu.pipeline_mode<synchronous>, transform_indices = @transform_8, window_bounds = array<i64: 8, 1>}, {transform_indices = @transform_9, window_bounds = array<i64: 1, 8, 128>}, {transform_indices = @transform_10, window_bounds = array<i64: 1, 8, 128>}]} {
    %c0 = arith.constant 0 : index
    %c0_0 = arith.constant 0 : index
    %c0_1 = arith.constant 0 : index
    %0 = vector.load %arg1[%c0, %c0_0, %c0_1] : memref<1x8x130xf32, #tpu.memory_space<vmem>>, vector<1x8x128xf32>
    %1 = vector.shape_cast %0 : vector<1x8x128xf32> to vector<8x128xf32>
    %c0_2 = arith.constant 0 : index
    %c0_3 = arith.constant 0 : index
    %c1 = arith.constant 1 : index
    %2 = vector.load %arg1[%c0_2, %c0_3, %c1] : memref<1x8x130xf32, #tpu.memory_space<vmem>>, vector<1x8x128xf32>
    %3 = vector.shape_cast %2 : vector<1x8x128xf32> to vector<8x128xf32>
    %c0_4 = arith.constant 0 : index
    %c0_5 = arith.constant 0 : index
    %c2 = arith.constant 2 : index
    %4 = vector.load %arg1[%c0_4, %c0_5, %c2] : memref<1x8x130xf32, #tpu.memory_space<vmem>>, vector<1x8x128xf32>
    %5 = vector.shape_cast %4 : vector<1x8x128xf32> to vector<8x128xf32>
    %6 = tpu.concatenate %1, %3, %5 in 0 : vector<8x128xf32>, vector<8x128xf32>, vector<8x128xf32> -> vector<24x128xf32>
    %c0_6 = arith.constant 0 : index
    %c0_7 = arith.constant 0 : index
    %7 = vector.load %arg2[%c0_6, %c0_7] : memref<8x24xf32, #tpu.memory_space<vmem>>, vector<8x24xf32>
    %cst = arith.constant dense<0.000000e+00> : vector<8x128xf32>
    %8 = tpu.matmul %7, %6, %cst {dimension_numbers = #tpu.dot_dimension_numbers<[1], [0], [0], [1], [0, 0, 1, 1], [], []>} : vector<8x24xf32>, vector<24x128xf32>, vector<8x128xf32> -> vector<8x128xf32>
    %c0_8 = arith.constant 0 : index
    %c0_9 = arith.constant 0 : index
    %9 = vector.load %arg3[%c0_8, %c0_9] : memref<8x1xf32, #tpu.memory_space<vmem>>, vector<8x1xf32>
    %10 = vector.broadcast %9 : vector<8x1xf32> to vector<8x128xf32>
    %11 = arith.addf %8, %10 : vector<8x128xf32>
    %12 = tpu.iota {dimensions = array<i32: 1>} : vector<8x128xi32>
    %13 = vector.extract_strided_slice %11 {offsets = [0, 0], sizes = [8, 1], strides = [1, 1]} : vector<8x128xf32> to vector<8x1xf32>
    %14 = vector.extract_strided_slice %11 {offsets = [0, 0], sizes = [8, 127], strides = [1, 1]} : vector<8x128xf32> to vector<8x127xf32>
    %15 = tpu.concatenate %13, %14 in 1 : vector<8x1xf32>, vector<8x127xf32> -> vector<8x128xf32>
    %16 = vector.extract_strided_slice %11 {offsets = [0, 1], sizes = [8, 127], strides = [1, 1]} : vector<8x128xf32> to vector<8x127xf32>
    %17 = vector.extract_strided_slice %11 {offsets = [0, 127], sizes = [8, 1], strides = [1, 1]} : vector<8x128xf32> to vector<8x1xf32>
    %18 = tpu.concatenate %16, %17 in 1 : vector<8x127xf32>, vector<8x1xf32> -> vector<8x128xf32>
    %c15_i32 = arith.constant 15 : i32
    %19 = vector.broadcast %c15_i32 : i32 to vector<8x128xi32>
    %20 = arith.cmpi eq, %12, %19 : vector<8x128xi32>
    %21 = arith.select %20, %11, %18 : vector<8x128xi1>, vector<8x128xf32>
    %cst_10 = arith.constant 7.500000e-01 : f32
    %22 = vector.broadcast %cst_10 : f32 to vector<8x128xf32>
    %23 = arith.mulf %22, %11 : vector<8x128xf32>
    %cst_11 = arith.constant 2.500000e-01 : f32
    %24 = vector.broadcast %cst_11 : f32 to vector<8x128xf32>
    %25 = arith.mulf %24, %15 : vector<8x128xf32>
    %26 = arith.addf %23, %25 : vector<8x128xf32>
    %cst_12 = arith.constant 7.500000e-01 : f32
    %27 = vector.broadcast %cst_12 : f32 to vector<8x128xf32>
    %28 = arith.mulf %27, %11 : vector<8x128xf32>
    %cst_13 = arith.constant 2.500000e-01 : f32
    %29 = vector.broadcast %cst_13 : f32 to vector<8x128xf32>
    %30 = arith.mulf %29, %21 : vector<8x128xf32>
    %31 = arith.addf %28, %30 : vector<8x128xf32>
    %cst_14 = arith.constant 0.000000e+00 : f32
    %32 = vector.broadcast %cst_14 : f32 to vector<8x1xf32>
    %33 = vector.extract_strided_slice %26 {offsets = [0, 0], sizes = [8, 127], strides = [1, 1]} : vector<8x128xf32> to vector<8x127xf32>
    %34 = tpu.concatenate %32, %33 in 1 : vector<8x1xf32>, vector<8x127xf32> -> vector<8x128xf32>
    %35 = vector.extract_strided_slice %31 {offsets = [0, 0], sizes = [8, 127], strides = [1, 1]} : vector<8x128xf32> to vector<8x127xf32>
    %36 = tpu.concatenate %32, %35 in 1 : vector<8x1xf32>, vector<8x127xf32> -> vector<8x128xf32>
    %37 = tpu.concatenate %34, %36, %26 in 0 : vector<8x128xf32>, vector<8x128xf32>, vector<8x128xf32> -> vector<24x128xf32>
    %c0_15 = arith.constant 0 : index
    %c0_16 = arith.constant 0 : index
    %38 = vector.load %arg4[%c0_15, %c0_16] : memref<8x24xf32, #tpu.memory_space<vmem>>, vector<8x24xf32>
    %cst_17 = arith.constant dense<0.000000e+00> : vector<8x128xf32>
    %39 = tpu.matmul %38, %37, %cst_17 {dimension_numbers = #tpu.dot_dimension_numbers<[1], [0], [0], [1], [0, 0, 1, 1], [], []>} : vector<8x24xf32>, vector<24x128xf32>, vector<8x128xf32> -> vector<8x128xf32>
    %c0_18 = arith.constant 0 : index
    %c0_19 = arith.constant 0 : index
    %40 = vector.load %arg5[%c0_18, %c0_19] : memref<8x1xf32, #tpu.memory_space<vmem>>, vector<8x1xf32>
    %41 = vector.broadcast %40 : vector<8x1xf32> to vector<8x128xf32>
    %42 = arith.addf %39, %41 : vector<8x128xf32>
    %cst_20 = arith.constant 0.000000e+00 : f32
    %43 = vector.broadcast %cst_20 : f32 to vector<8x128xf32>
    %44 = arith.subf %43, %42 : vector<8x128xf32>
    %45 = math.exp %44 : vector<8x128xf32>
    %cst_21 = arith.constant 1.000000e+00 : f32
    %46 = vector.broadcast %cst_21 : f32 to vector<8x128xf32>
    %47 = arith.addf %46, %45 : vector<8x128xf32>
    %cst_22 = arith.constant 1.000000e+00 : f32
    %48 = vector.broadcast %cst_22 : f32 to vector<8x128xf32>
    %49 = arith.divf %48, %47 : vector<8x128xf32>
    %50 = arith.mulf %42, %49 : vector<8x128xf32>
    %cst_23 = arith.constant dense<0.000000e+00> : vector<128xf32>
    %51 = vector.multi_reduction <add>, %50, %cst_23 [0] : vector<8x128xf32> to vector<128xf32>
    %52 = vector.shape_cast %51 : vector<128xf32> to vector<1x128xf32>
    %cst_24 = arith.constant 1.250000e-01 : f32
    %53 = vector.broadcast %cst_24 : f32 to vector<1x128xf32>
    %54 = arith.mulf %52, %53 : vector<1x128xf32>
    %55 = arith.mulf %50, %50 : vector<8x128xf32>
    %cst_25 = arith.constant dense<0.000000e+00> : vector<128xf32>
    %56 = vector.multi_reduction <add>, %55, %cst_25 [0] : vector<8x128xf32> to vector<128xf32>
    %57 = vector.shape_cast %56 : vector<128xf32> to vector<1x128xf32>
    %cst_26 = arith.constant 1.250000e-01 : f32
    %58 = vector.broadcast %cst_26 : f32 to vector<1x128xf32>
    %59 = arith.mulf %57, %58 : vector<1x128xf32>
    %60 = arith.mulf %54, %54 : vector<1x128xf32>
    %61 = arith.subf %59, %60 : vector<1x128xf32>
    %62 = vector.broadcast %54 : vector<1x128xf32> to vector<8x128xf32>
    %63 = arith.subf %50, %62 : vector<8x128xf32>
    %cst_27 = arith.constant 9.99999974E-6 : f32
    %64 = vector.broadcast %cst_27 : f32 to vector<1x128xf32>
    %65 = arith.addf %61, %64 : vector<1x128xf32>
    %66 = math.rsqrt %65 : vector<1x128xf32>
    %67 = vector.broadcast %66 : vector<1x128xf32> to vector<8x128xf32>
    %68 = arith.mulf %63, %67 : vector<8x128xf32>
    %c0_28 = arith.constant 0 : index
    %c0_29 = arith.constant 0 : index
    %69 = vector.load %arg8[%c0_28, %c0_29] : memref<8x1xf32, #tpu.memory_space<vmem>>, vector<8x1xf32>
    %70 = vector.broadcast %69 : vector<8x1xf32> to vector<8x128xf32>
    %71 = arith.mulf %68, %70 : vector<8x128xf32>
    %c0_30 = arith.constant 0 : index
    %c0_31 = arith.constant 0 : index
    %72 = vector.load %arg9[%c0_30, %c0_31] : memref<8x1xf32, #tpu.memory_space<vmem>>, vector<8x1xf32>
    %73 = vector.broadcast %72 : vector<8x1xf32> to vector<8x128xf32>
    %74 = arith.addf %71, %73 : vector<8x128xf32>
    %75 = tpu.concatenate %36, %26, %31 in 0 : vector<8x128xf32>, vector<8x128xf32>, vector<8x128xf32> -> vector<24x128xf32>
    %c0_32 = arith.constant 0 : index
    %c0_33 = arith.constant 0 : index
    %76 = vector.load %arg4[%c0_32, %c0_33] : memref<8x24xf32, #tpu.memory_space<vmem>>, vector<8x24xf32>
    %cst_34 = arith.constant dense<0.000000e+00> : vector<8x128xf32>
    %77 = tpu.matmul %76, %75, %cst_34 {dimension_numbers = #tpu.dot_dimension_numbers<[1], [0], [0], [1], [0, 0, 1, 1], [], []>} : vector<8x24xf32>, vector<24x128xf32>, vector<8x128xf32> -> vector<8x128xf32>
    %c0_35 = arith.constant 0 : index
    %c0_36 = arith.constant 0 : index
    %78 = vector.load %arg5[%c0_35, %c0_36] : memref<8x1xf32, #tpu.memory_space<vmem>>, vector<8x1xf32>
    %79 = vector.broadcast %78 : vector<8x1xf32> to vector<8x128xf32>
    %80 = arith.addf %77, %79 : vector<8x128xf32>
    %cst_37 = arith.constant 0.000000e+00 : f32
    %81 = vector.broadcast %cst_37 : f32 to vector<8x128xf32>
    %82 = arith.subf %81, %80 : vector<8x128xf32>
    %83 = math.exp %82 : vector<8x128xf32>
    %cst_38 = arith.constant 1.000000e+00 : f32
    %84 = vector.broadcast %cst_38 : f32 to vector<8x128xf32>
    %85 = arith.addf %84, %83 : vector<8x128xf32>
    %cst_39 = arith.constant 1.000000e+00 : f32
    %86 = vector.broadcast %cst_39 : f32 to vector<8x128xf32>
    %87 = arith.divf %86, %85 : vector<8x128xf32>
    %88 = arith.mulf %80, %87 : vector<8x128xf32>
    %cst_40 = arith.constant dense<0.000000e+00> : vector<128xf32>
    %89 = vector.multi_reduction <add>, %88, %cst_40 [0] : vector<8x128xf32> to vector<128xf32>
    %90 = vector.shape_cast %89 : vector<128xf32> to vector<1x128xf32>
    %cst_41 = arith.constant 1.250000e-01 : f32
    %91 = vector.broadcast %cst_41 : f32 to vector<1x128xf32>
    %92 = arith.mulf %90, %91 : vector<1x128xf32>
    %93 = arith.mulf %88, %88 : vector<8x128xf32>
    %cst_42 = arith.constant dense<0.000000e+00> : vector<128xf32>
    %94 = vector.multi_reduction <add>, %93, %cst_42 [0] : vector<8x128xf32> to vector<128xf32>
    %95 = vector.shape_cast %94 : vector<128xf32> to vector<1x128xf32>
    %cst_43 = arith.constant 1.250000e-01 : f32
    %96 = vector.broadcast %cst_43 : f32 to vector<1x128xf32>
    %97 = arith.mulf %95, %96 : vector<1x128xf32>
    %98 = arith.mulf %92, %92 : vector<1x128xf32>
    %99 = arith.subf %97, %98 : vector<1x128xf32>
    %100 = vector.broadcast %92 : vector<1x128xf32> to vector<8x128xf32>
    %101 = arith.subf %88, %100 : vector<8x128xf32>
    %cst_44 = arith.constant 9.99999974E-6 : f32
    %102 = vector.broadcast %cst_44 : f32 to vector<1x128xf32>
    %103 = arith.addf %99, %102 : vector<1x128xf32>
    %104 = math.rsqrt %103 : vector<1x128xf32>
    %105 = vector.broadcast %104 : vector<1x128xf32> to vector<8x128xf32>
    %106 = arith.mulf %101, %105 : vector<8x128xf32>
    %c0_45 = arith.constant 0 : index
    %c0_46 = arith.constant 0 : index
    %107 = vector.load %arg8[%c0_45, %c0_46] : memref<8x1xf32, #tpu.memory_space<vmem>>, vector<8x1xf32>
    %108 = vector.broadcast %107 : vector<8x1xf32> to vector<8x128xf32>
    %109 = arith.mulf %106, %108 : vector<8x128xf32>
    %c0_47 = arith.constant 0 : index
    %c0_48 = arith.constant 0 : index
    %110 = vector.load %arg9[%c0_47, %c0_48] : memref<8x1xf32, #tpu.memory_space<vmem>>, vector<8x1xf32>
    %111 = vector.broadcast %110 : vector<8x1xf32> to vector<8x128xf32>
    %112 = arith.addf %109, %111 : vector<8x128xf32>
    %113 = vector.extract_strided_slice %74 {offsets = [0, 0], sizes = [8, 127], strides = [1, 1]} : vector<8x128xf32> to vector<8x127xf32>
    %114 = tpu.concatenate %32, %113 in 1 : vector<8x1xf32>, vector<8x127xf32> -> vector<8x128xf32>
    %115 = vector.extract_strided_slice %112 {offsets = [0, 0], sizes = [8, 127], strides = [1, 1]} : vector<8x128xf32> to vector<8x127xf32>
    %116 = tpu.concatenate %32, %115 in 1 : vector<8x1xf32>, vector<8x127xf32> -> vector<8x128xf32>
    %117 = tpu.concatenate %114, %116, %74 in 0 : vector<8x128xf32>, vector<8x128xf32>, vector<8x128xf32> -> vector<24x128xf32>
    %c0_49 = arith.constant 0 : index
    %c0_50 = arith.constant 0 : index
    %118 = vector.load %arg6[%c0_49, %c0_50] : memref<8x24xf32, #tpu.memory_space<vmem>>, vector<8x24xf32>
    %cst_51 = arith.constant dense<0.000000e+00> : vector<8x128xf32>
    %119 = tpu.matmul %118, %117, %cst_51 {dimension_numbers = #tpu.dot_dimension_numbers<[1], [0], [0], [1], [0, 0, 1, 1], [], []>} : vector<8x24xf32>, vector<24x128xf32>, vector<8x128xf32> -> vector<8x128xf32>
    %c0_52 = arith.constant 0 : index
    %c0_53 = arith.constant 0 : index
    %120 = vector.load %arg7[%c0_52, %c0_53] : memref<8x1xf32, #tpu.memory_space<vmem>>, vector<8x1xf32>
    %121 = vector.broadcast %120 : vector<8x1xf32> to vector<8x128xf32>
    %122 = arith.addf %119, %121 : vector<8x128xf32>
    %123 = arith.addf %122, %26 : vector<8x128xf32>
    %124 = tpu.concatenate %116, %74, %112 in 0 : vector<8x128xf32>, vector<8x128xf32>, vector<8x128xf32> -> vector<24x128xf32>
    %c0_54 = arith.constant 0 : index
    %c0_55 = arith.constant 0 : index
    %125 = vector.load %arg6[%c0_54, %c0_55] : memref<8x24xf32, #tpu.memory_space<vmem>>, vector<8x24xf32>
    %cst_56 = arith.constant dense<0.000000e+00> : vector<8x128xf32>
    %126 = tpu.matmul %125, %124, %cst_56 {dimension_numbers = #tpu.dot_dimension_numbers<[1], [0], [0], [1], [0, 0, 1, 1], [], []>} : vector<8x24xf32>, vector<24x128xf32>, vector<8x128xf32> -> vector<8x128xf32>
    %c0_57 = arith.constant 0 : index
    %c0_58 = arith.constant 0 : index
    %127 = vector.load %arg7[%c0_57, %c0_58] : memref<8x1xf32, #tpu.memory_space<vmem>>, vector<8x1xf32>
    %128 = vector.broadcast %127 : vector<8x1xf32> to vector<8x128xf32>
    %129 = arith.addf %126, %128 : vector<8x128xf32>
    %130 = arith.addf %129, %31 : vector<8x128xf32>
    %c0_59 = arith.constant 0 : index
    %c0_60 = arith.constant 0 : index
    %c0_61 = arith.constant 0 : index
    %131 = vector.load %arg10[%c0_59, %c0_60, %c0_61] : memref<1x8x128xf32, #tpu.memory_space<vmem>>, vector<1x8x128xf32>
    %132 = vector.shape_cast %131 : vector<1x8x128xf32> to vector<8x128xf32>
    %133 = vector.shape_cast %123 : vector<8x128xf32> to vector<1x8x128xf32>
    tpu.vector_store %arg10[%c0_59, %c0_60, %c0_61], %133 {strides = array<i32>} : memref<1x8x128xf32, #tpu.memory_space<vmem>>, vector<1x8x128xf32>,
    %c0_62 = arith.constant 0 : index
    %c0_63 = arith.constant 0 : index
    %c0_64 = arith.constant 0 : index
    %134 = vector.load %arg11[%c0_62, %c0_63, %c0_64] : memref<1x8x128xf32, #tpu.memory_space<vmem>>, vector<1x8x128xf32>
    %135 = vector.shape_cast %134 : vector<1x8x128xf32> to vector<8x128xf32>
    %136 = vector.shape_cast %130 : vector<8x128xf32> to vector<1x8x128xf32>
    tpu.vector_store %arg11[%c0_62, %c0_63, %c0_64], %136 {strides = array<i32>} : memref<1x8x128xf32, #tpu.memory_space<vmem>>, vector<1x8x128xf32>,
    return
  }
  func.func @transform_0(%arg0: i32) -> (i32, i32, i32) {
    %c0_i32 = arith.constant 0 : i32
    %c0_i32_0 = arith.constant 0 : i32
    %c0_i32_1 = arith.constant 0 : i32
    return %arg0, %c0_i32, %c0_i32_0 : i32, i32, i32
  }
  func.func @transform_1(%arg0: i32) -> (i32, i32) {
    %c0_i32 = arith.constant 0 : i32
    %c0_i32_0 = arith.constant 0 : i32
    %c0_i32_1 = arith.constant 0 : i32
    return %c0_i32, %c0_i32_0 : i32, i32
  }
  func.func @transform_2(%arg0: i32) -> (i32, i32) {
    %c0_i32 = arith.constant 0 : i32
    %c0_i32_0 = arith.constant 0 : i32
    %c0_i32_1 = arith.constant 0 : i32
    return %c0_i32, %c0_i32_0 : i32, i32
  }
  func.func @transform_3(%arg0: i32) -> (i32, i32) {
    %c0_i32 = arith.constant 0 : i32
    %c0_i32_0 = arith.constant 0 : i32
    %c0_i32_1 = arith.constant 0 : i32
    return %c0_i32, %c0_i32_0 : i32, i32
  }
  func.func @transform_4(%arg0: i32) -> (i32, i32) {
    %c0_i32 = arith.constant 0 : i32
    %c0_i32_0 = arith.constant 0 : i32
    %c0_i32_1 = arith.constant 0 : i32
    return %c0_i32, %c0_i32_0 : i32, i32
  }
  func.func @transform_5(%arg0: i32) -> (i32, i32) {
    %c0_i32 = arith.constant 0 : i32
    %c0_i32_0 = arith.constant 0 : i32
    %c0_i32_1 = arith.constant 0 : i32
    return %c0_i32, %c0_i32_0 : i32, i32
  }
  func.func @transform_6(%arg0: i32) -> (i32, i32) {
    %c0_i32 = arith.constant 0 : i32
    %c0_i32_0 = arith.constant 0 : i32
    %c0_i32_1 = arith.constant 0 : i32
    return %c0_i32, %c0_i32_0 : i32, i32
  }
  func.func @transform_7(%arg0: i32) -> (i32, i32) {
    %c0_i32 = arith.constant 0 : i32
    %c0_i32_0 = arith.constant 0 : i32
    %c0_i32_1 = arith.constant 0 : i32
    return %c0_i32, %c0_i32_0 : i32, i32
  }
  func.func @transform_8(%arg0: i32) -> (i32, i32) {
    %c0_i32 = arith.constant 0 : i32
    %c0_i32_0 = arith.constant 0 : i32
    %c0_i32_1 = arith.constant 0 : i32
    return %c0_i32, %c0_i32_0 : i32, i32
  }
  func.func @transform_9(%arg0: i32) -> (i32, i32, i32) {
    %c0_i32 = arith.constant 0 : i32
    %c0_i32_0 = arith.constant 0 : i32
    %c0_i32_1 = arith.constant 0 : i32
    return %arg0, %c0_i32, %c0_i32_0 : i32, i32, i32
  }
  func.func @transform_10(%arg0: i32) -> (i32, i32, i32) {
    %c0_i32 = arith.constant 0 : i32
    %c0_i32_0 = arith.constant 0 : i32
    %c0_i32_1 = arith.constant 0 : i32
    return %arg0, %c0_i32, %c0_i32_0 : i32, i32, i32
  }
}

</mosaic_0001>

<bundles_post_ra>
// kernel: up_forward.1
= control target key start
LH: loop header
LB: loop body
LE: loop exit
PB: predicated region body
PF: predicated region fallthrough
CT: control target
= control target key end

     0   :  { %s1196_s13 = smov 0   ;;  %s1314_s0 = inlined_call_operand.vmem [shape: f32[2,8,130], index: 0, kind: input, shape index: {}]   ;;  %s1315_s1 = inlined_call_operand.vmem [shape: f32[8,24], index: 1, kind: input, shape index: {}]   ;;  %s1316_s2 = inlined_call_operand.vmem [shape: f32[8,1], index: 2, kind: input, shape index: {}]   ;;  %s1317_s3 = inlined_call_operand.vmem [shape: f32[8,24], index: 3, kind: input, shape index: {}]   ;;  %s1318_s4 = inlined_call_operand.vmem [shape: f32[8,1], index: 4, kind: input, shape index: {}]   ;;  %s1319_s5 = inlined_call_operand.vmem [shape: f32[8,24], index: 5, kind: input, shape index: {}]   ;;  %s1320_s6 = inlined_call_operand.vmem [shape: f32[8,1], index: 6, kind: input, shape index: {}]   ;;  %s1321_s7 = inlined_call_operand.vmem [shape: f32[8,1], index: 7, kind: input, shape index: {}]   ;;  %s1322_s8 = inlined_call_operand.vmem [shape: f32[8,1], index: 8, kind: input, shape index: {}]   ;;  %s1323_s9 = inlined_call_operand.vmem [shape: f32[2,8,128], index: 9, kind: output, shape index: {0}]   ;;  %s1324_s10 = inlined_call_operand.vmem [shape: f32[2,8,128], index: 10, kind: output, shape index: {1}]  }
   0x1 LB: > { %s967_s14 = sadd.s32 4294967295, %s1131_s13   ;;  %p971_p0 = scmp.ge.s32.totalorder %s1131_s13, 1  ;;  %s1131_s13 = sphi %s1196_s13, %s21_s13  }
   0x2   : > { %p315_p1 = scmp.lt.s32.totalorder %s1131_s13, 3 }
   0x4   : > { %p316_p2 = pnand %p971_p0, %p315_p1 }
   0x5   : > { %p356_p3 = scmp.lt.s32.totalorder (!%p316_p2), %s967_s14, 1  ;;  %v1133_v0 = vmov (!%p316_p2), 0.0|0.0   ;;  %vm1134_vm0 = vmmov (!%p316_p2), 0   ;;  %v1135_v1 = vmov (!%p316_p2), 0.0   ;;  %s1136_s19 = smov (!%p316_p2), 126   ;;  %v1137_v5 = vmov (!%p316_p2), 0  }
   0x6   : > { %319 = sbr.rel (%p316_p2) target bundleno = 1230 (0x4ce), region = 56  ;;  %1061 = vmatprep.subr.bf16.mxu0 (!%p316_p2), %v1133_v0  ;;  %1064 = vmatprep.subr.bf16.mxu1 (!%p316_p2), %v1133_v0  ;;  %v388_v6 = vld [vmem:[%s1316_s2] sm:$0xff] (!%p316_p2)  ;;  %s1138_s22 = smov (!%p316_p2), 127   ;;  %vm377_vm1 = vcmask (!%p316_p2), 1039360   ;;  %vm384_vm2 = vcmask (!%p316_p2), 1031168   ;;  %vm394_vm3 = vcmask (!%p316_p2), 195584   ;;  %v468_v22 = vlaneseq (!%p316_p2) }
   0x7   : > { %1022 = vmatprep.mubr.msk.f32.mxu0 (!%p316_p2), %vm1134_vm0, %v1135_v1  ;;  %1031 = vmatprep.mubr.msk.f32.mxu1 (!%p316_p2), %vm1134_vm0, %v1135_v1  ;;  %v387_v15 = vld [vmem:[%s1315_s1] sm:$0xff] (!%p316_p2)  ;;  %s1139_s25 = smov (!%p316_p2), 1   ;;  %vm474_vm4 = vcmask (!%p316_p2), 7168   ;;  %vm1140_vm8 = vmmov (!%p316_p2), 1  }
   0x8   : > { %1107 = vset.pattern.permute.xlu0 (!%p316_p2), %v1137_v5  ;;  %1101 = vset.pattern.permute.xlu1 (!%p316_p2), %v1137_v5  ;;  %v498_v20 = vld [vmem:[%s1318_s4] sm:$0xff] (!%p316_p2)  ;;  %v469_v23 = vand.u32 (!%p316_p2), 127, %v468_v22  ;;  %vm1251_vm6 = vmneg (!%p316_p2), %vm474_vm4 }
   0x9   : > { %v612_v21 = vld [vmem:[%s1322_s8] sm:$0xff] (!%p316_p2)  ;;  %vm1066_vm7 = vmpackc.low (!%p316_p2), %vm1251_vm6, %vm1251_vm6 }
   0xa   : > { %vm480_vm5 = vcmp.eq.s32.totalorder (!%p316_p2), %v469_v23, 15  ;;  %v605_v35 = vld [vmem:[%s1321_s7] sm:$0xff] (!%p316_p2)  ;;  %vm1260_vm9 = vmpackc.low (!%p316_p2), %vm1140_vm8, %vm1251_vm6 }
   0xb   : > { %v730_v36 = vld [vmem:[%s1320_s6] sm:$0xff] (!%p316_p2) }
   0xc   : > { %v497_v44 = vld [vmem:[%s1317_s3] sm:$0xff] (!%p316_p2) }
   0xd   : > { %s1330_s14 = smov (!%p356_p3, %s967_s14), 1 }
   0xe   : > { %s995_s15 = sshll.u32 %s1330_s14, 4  ;;  %s974_s20 = sshll.u32 %s1330_s14, 3 }
   0xf   : > { %s360_s18 = scalar_lea.vmem %s1314_s0, %s995_s15  ;;  %s364_s23 = scalar_lea.vmem %s1323_s9, %s974_s20 }
  0x10   : > { %v369_v2 = vld [vmem:[%s360_s18] sm:$0xff]  ;;  %v370_v3 = vld [vmem:[%s360_s18 + $0x8] sm:$0xff]  ;;  %s368_s26 = scalar_lea.vmem %s1324_s10, %s974_s20 }
  0x11   : > { %v1096_v4 = vpack.i.bf16 %v370_v3, %v369_v2  ;;  %382 = vrot.lane.b32.xlu1 %v370_v3, %s1136_s19 }
  0x13   : > { %1097 = vrot.lane.b32.xlu0 %v1096_v4, %s1138_s22 }
  0x15   : > { %391 = vperm.xlu1 %1101, %v388_v6  }
  0x17   : > { %380 = vrot.lane.b32.xlu0 %v369_v2, %s1136_s19 }
  0x83   : > { %v383_v12 = vpop.permute.xlu1 %382 }
  0x85   : > { %v1098_v7 = vpop.permute.xlu0 %1097 }
  0x86   : > { %v1100_v8 = vunpack.i.h.bf16 %v1098_v7  ;;  %v1099_v9 = vunpack.i.l.bf16 %v1098_v7 }
  0x88   : > { %v378_v10 = vsel %vm377_vm1, %v1099_v9, %v1100_v8 }
  0x89   : > { %v1062_v11 = vpack.c.bf16 %v378_v10, %v369_v2  ;;  %v381_v13 = vpop.permute.xlu0 %380 }
  0x8a   : > { %v385_v14 = vsel %vm384_vm2, %v381_v13, %v383_v12 }
  0x8b   : > { %1063 = vmatpush3.bf16.msra.mxu0 %v1062_v11 }
  0x8c   : > { %1020 = vmatprep.subr.mxu0 %v1135_v1 }
  0x8f   : > { %1021 = vmatpush3.msra.mxu0 %v385_v14 }
  0x90   : > { %1023 = vmatmul.mubr.msk.f32.vlgmr.msra.gmra.mrb[0].mxu0 %vm394_vm3, %v387_v15  ;;  %1068 = vmatprep.subr.bf16.mxu0 %v1133_v0 }
  0x91   : > { %1040 = vmatprep.mubr.msk.f32.mxu0 %vm1134_vm0, %v1135_v1 }
  0x94   : > { %v392_v16 = vpop.permute.xlu1 %391 }
 0x163   : > { %v464_v17 = vpop.f32.mrb[0].mxu0 }
 0x164   : > { %v465_v18 = vadd.f32 %v464_v17, %v392_v16  ;;  %v1024_v19 = vpop.f32.mrb[1].mxu0 }
 0x166   : > { %471 = vrot.lane.b32.xlu1 %v465_v18, %s1139_s25  ;;  %476 = vrot.lane.b32.xlu0 %v465_v18, %s1138_s22  ;;  %v482_v28 = vmul.f32 0.75, %v465_v18 }
 0x16a   : > { %501 = vperm.xlu1 %1101, %v498_v20  }
 0x16e   : > { %615 = vperm.xlu1 %1101, %v612_v21  }
 0x1d8   : > { %v472_v24 = vpop.permute.xlu1 %471  ;;  %v477_v25 = vpop.permute.xlu0 %476 }
 0x1d9   : > { %v475_v26 = vsel %vm474_vm4, %v465_v18, %v472_v24  ;;  %v479_v27 = vsel %vm377_vm1, %v477_v25, %v465_v18 }
 0x1da   : > { %v483_v29 = vmul.f32 0.25, %v475_v26  ;;  %v481_v30 = vsel %vm480_vm5, %v465_v18, %v479_v27 }
 0x1db   : > { %v485_v31 = vmul.f32 0.25, %v481_v30 }
 0x1dc   : > { %v1237_v32 = vadd.f32 %v483_v29, %v482_v28 }
 0x1dd   : > { %v1239_v33 = vadd.f32 %v485_v31, %v482_v28 }
 0x1df   : > { %v1102_v34 = vpack.i.bf16 %v1239_v33, %v1237_v32 }
 0x1e1   : > { %1103 = vrot.lane.b32.xlu0 %v1102_v34, %s1139_s25 }
 0x1e5   : > { %608 = vperm.xlu0 %1107, %v605_v35  }
 0x1e9   : > { %733 = vperm.xlu0 %1107, %v730_v36   ;;  %v502_v45 = vpop.permute.xlu1 %501 }
 0x253   : > { %v1104_v38 = vpop.permute.xlu0 %1103 }
 0x254   : > { %v1106_v39 = vunpack.i.h.bf16 %v1104_v38  ;;  %v1105_v40 = vunpack.i.l.bf16 %v1104_v38 }
 0x256   : > { %v1069_v42 = vpack.c.bf16 %v1237_v32, %v1106_v39  ;;  %v1065_v43 = vpack.c.bf16 %v1106_v39, %v1105_v40 }
 0x258   : > { %1067 = vmatpush3.bf16.msk.msra.mxu1 %vm1066_vm7, %v1065_v43  ;;  %1071 = vmatpush3.bf16.msk.msra.mxu0 %vm1260_vm9, %v1069_v42 }
 0x259   : > { %1029 = vmatprep.subr.mxu1 %v1135_v1  ;;  %1038 = vmatprep.subr.mxu0 %v1135_v1 }
 0x25c   : > { %1030 = vmatpush3.msra.mxu1 %v1237_v32  ;;  %1039 = vmatpush3.msra.mxu0 %v1239_v33 }
 0x25d   : > { %1032 = vmatmul.mubr.msk.f32.vlgmr.msra.gmra.mrb[0].mxu1 %vm394_vm3, %v497_v44  ;;  %1041 = vmatmul.mubr.msk.f32.vlgmr.msra.gmra.mrb[2].mxu0 %vm394_vm3, %v497_v44 }
 0x25e   : > { %1072 = vmatprep.subr.bf16.mxu1 %v1133_v0  ;;  %1076 = vmatprep.subr.bf16.mxu0 %v1133_v0 }
 0x25f   : > { %1049 = vmatprep.mubr.msk.f32.mxu1 %vm1134_vm0, %v1135_v1  ;;  %1058 = vmatprep.mubr.msk.f32.mxu0 %vm1134_vm0, %v1135_v1 }
 0x330   : > { %v573_v46 = vpop.f32.mrb[0].mxu1  ;;  %v685_v47 = vpop.f32.mrb[2].mxu0 }
 0x331   : > { %v574_v48 = vadd.f32 %v573_v46, %v502_v45  ;;  %v686_v49 = vadd.f32 %v685_v47, %v502_v45  ;;  %v1033_v50 = vpop.f32.mrb[1].mxu1  ;;  %v1042_v51 = vpop.f32.mrb[3].mxu0 }
 0x332   : > { %v609_v46 = vpop.permute.xlu0 %608 }
 0x333   : > { %v577_v52 = vsub.f32 0.0, %v574_v48  ;;  %v689_v53 = vsub.f32 0.0, %v686_v49 }
 0x335   : > { %v578_v54 = vmul.f32 1.442695, %v577_v52  ;;  %v690_v55 = vmul.f32 1.442695, %v689_v53 }
 0x336   : > { %v734_v37 = vpop.permute.xlu0 %733 }
 0x337   : > { %1113 = vpow2.f32 %v578_v54 }
 0x338   : > { %1115 = vpow2.f32 %v690_v55 }
 0x341   : > { %v1114_v56 = vpop.eup %1113 }
 0x342   : > { %v1116_v57 = vpop.eup %1115  ;;  %v580_v58 = vadd.f32 1.0, %v1114_v56 }
 0x343   : > { %v692_v59 = vadd.f32 1.0, %v1116_v57 }
 0x344   : > { %1117 = vrcp.f32 %v580_v58 }
 0x345   : > { %1119 = vrcp.f32 %v692_v59  ;;  %v729_v59 = vld [vmem:[%s1319_s5] sm:$0xff] }
 0x34e   : > { %v1118_v60 = vpop.eup %1117 }
 0x34f   : > { %v1120_v61 = vpop.eup %1119  ;;  %v583_v62 = vmul.f32 %v1118_v60, %v574_v48 }
 0x350   : > { %v695_v63 = vmul.f32 %v1120_v61, %v686_v49  ;;  %v616_v49 = vpop.permute.xlu1 %615 }
 0x351   : > { %v584_v0 = vrot.slane %v583_v62, 4  ;;  %v591_v2 = vmul.f32 %v583_v62, %v583_v62 }
 0x352   : > { %v696_v3 = vrot.slane %v695_v63, 4  ;;  %v703_v4 = vmul.f32 %v695_v63, %v695_v63 }
 0x353   : > { %v585_v5 = vadd.f32 %v584_v0, %v583_v62  ;;  %v592_v6 = vrot.slane %v591_v2, 4 }
 0x354   : > { %v697_v7 = vadd.f32 %v696_v3, %v695_v63  ;;  %v704_v8 = vrot.slane %v703_v4, 4 }
 0x355   : > { %v593_v9 = vadd.f32 %v592_v6, %v591_v2  ;;  %v586_v10 = vrot.slane %v585_v5, 2 }
 0x356   : > { %v705_v11 = vadd.f32 %v704_v8, %v703_v4  ;;  %v698_v12 = vrot.slane %v697_v7, 2 }
 0x357   : > { %v594_v13 = vrot.slane %v593_v9, 2  ;;  %v587_v14 = vadd.f32 %v586_v10, %v585_v5 }
 0x358   : > { %v706_v15 = vrot.slane %v705_v11, 2  ;;  %v699_v16 = vadd.f32 %v698_v12, %v697_v7 }
 0x359   : > { %v595_v17 = vadd.f32 %v594_v13, %v593_v9  ;;  %v588_v18 = vrot.slane %v587_v14, 1 }
 0x35a   : > { %v707_v19 = vadd.f32 %v706_v15, %v705_v11  ;;  %v700_v20 = vrot.slane %v699_v16, 1 }
 0x35b   : > { %v589_v21 = vadd.f32 %v588_v18, %v587_v14  ;;  %v596_v22 = vrot.slane %v595_v17, 1 }
 0x35c   : > { %v701_v23 = vadd.f32 %v700_v20, %v699_v16  ;;  %v708_v24 = vrot.slane %v707_v19, 1 }
 0x35d   : > { %v590_v25 = vmul.f32 0.125, %v589_v21  ;;  %v597_v26 = vadd.f32 %v596_v22, %v595_v17 }
 0x35e   : > { %v702_v27 = vmul.f32 0.125, %v701_v23  ;;  %v709_v28 = vadd.f32 %v708_v24, %v707_v19 }
 0x35f   : > { %v598_v29 = vmul.f32 0.125, %v597_v26  ;;  %v599_v30 = vmul.f32 %v590_v25, %v590_v25  ;;  %v601_v40 = vsub.f32 %v583_v62, %v590_v25 }
 0x360   : > { %v710_v31 = vmul.f32 0.125, %v709_v28  ;;  %v711_v34 = vmul.f32 %v702_v27, %v702_v27  ;;  %v713_v43 = vsub.f32 %v695_v63, %v702_v27 }
 0x361   : > { %v600_v35 = vsub.f32 %v598_v29, %v599_v30 }
 0x362   : > { %v712_v36 = vsub.f32 %v710_v31, %v711_v34 }
 0x363   : > { %v602_v38 = vadd.f32 1e-05, %v600_v35 }
 0x364   : > { %v714_v39 = vadd.f32 1e-05, %v712_v36 }
 0x365   : > { %1121 = vrsqrt.f32 %v602_v38 }
 0x366   : > { %1123 = vrsqrt.f32 %v714_v39 }
 0x36f   : > { %v1122_v42 = vpop.eup %1121 }
 0x370   : > { %v1124_v44 = vpop.eup %1123  ;;  %v604_v45 = vmul.f32 %v1122_v42, %v601_v40 }
 0x371   : > { %v716_v47 = vmul.f32 %v1124_v44, %v713_v43 }
 0x372   : > { %v611_v48 = vmul.f32 %v609_v46, %v604_v45 }
 0x373   : > { %v717_v50 = vmul.f32 %v716_v47, %v609_v46 }
 0x374   : > { %v618_v51 = vadd.f32 %v616_v49, %v611_v48 }
 0x375   : > { %v718_v52 = vadd.f32 %v717_v50, %v616_v49 }
 0x377   : > { %v1108_v53 = vpack.i.bf16 %v718_v52, %v618_v51 }
 0x379   : > { %1109 = vrot.lane.b32.xlu1 %v1108_v53, %s1139_s25 }
 0x3eb   : > { %v1110_v54 = vpop.permute.xlu1 %1109 }
 0x3ec   : > { %v1112_v55 = vunpack.i.h.bf16 %v1110_v54  ;;  %v1111_v56 = vunpack.i.l.bf16 %v1110_v54 }
 0x3ee   : > { %v1077_v57 = vpack.c.bf16 %v618_v51, %v1112_v55  ;;  %v1073_v58 = vpack.c.bf16 %v1112_v55, %v1111_v56 }
 0x3f0   : > { %1075 = vmatpush3.bf16.msk.msra.mxu1 %vm1066_vm7, %v1073_v58  ;;  %1079 = vmatpush3.bf16.msk.msra.mxu0 %vm1260_vm9, %v1077_v57 }
 0x3f1   : > { %1047 = vmatprep.subr.mxu1 %v1135_v1  ;;  %1056 = vmatprep.subr.mxu0 %v1135_v1 }
 0x3f4   : > { %1048 = vmatpush3.msra.mxu1 %v618_v51  ;;  %1057 = vmatpush3.msra.mxu0 %v718_v52 }
 0x3f5   : > { %1050 = vmatmul.mubr.msk.f32.vlgmr.msra.gmra.mrb[2].mxu1 %vm394_vm3, %v729_v59  ;;  %1059 = vmatmul.mubr.msk.f32.vlgmr.msra.gmra.mrb[4].mxu0 %vm394_vm3, %v729_v59 }
 0x4c8   : > { %v805_v60 = vpop.f32.mrb[2].mxu1  ;;  %v876_v61 = vpop.f32.mrb[4].mxu0 }
 0x4c9   : > { %v806_v41 = vadd.f32 %v805_v60, %v734_v37  ;;  %v877_v62 = vadd.f32 %v876_v61, %v734_v37  ;;  %v1051_v63 = vpop.f32.mrb[3].mxu1  ;;  %v1060_v0 = vpop.f32.mrb[5].mxu0 }
 0x4cb   : > { %v809_v1 = vadd.f32 %v806_v41, %v1237_v32  ;;  %v880_v2 = vadd.f32 %v877_v62, %v1239_v33 }
 0x4cd   : > { %881 = vst [vmem:[%s364_s23] sm:$0xff] %v809_v1  ;;  %882 = vst [vmem:[%s368_s26] sm:$0xff] %v880_v2 }
 0x4ce PF: > { %s21_s13 = sadd.s32 1, %s1131_s13  }
 0x4cf   : > { %p18_p4 = scmp.ge.s32.totalorder %s21_s13, 4  }
 0x4d1   :  { %20 = sbr.rel (!%p18_p4) target bundleno = 1 (0x1), region = 98 }

</bundles_post_ra>
